<compile_context>
chip_gen: v7x
topology: tpu7x:2x2x1
jax: 0.10.0
libtpu: 0.0.40
codegen_flags: <defaults>
</compile_context>

<pallas_src>
import jax
import jax.numpy as jnp
from jax.experimental import pallas as pl
from jax.experimental.pallas import tpu as pltpu

C_IN = 3
C_OUT = 3


def _n_to_one_kernel(w1_ref, w2_ref, x1_ref, x2_ref, y_ref):
    """y[o, :] = sum_c ( w1[o,c] * x1[c, :] + w2[o,c] * x2[c, :] ).

    w1_ref, w2_ref : (C_OUT, C_IN) f32 scalars in SMEM
    x1_ref, x2_ref : (C_IN,  THW)  f32 tiles in VMEM (batch dim squeezed)
    y_ref          : (C_OUT, THW)  f32 tile in VMEM
    """
    x1 = x1_ref[...]                                  # (C_IN, THW)
    x2 = x2_ref[...]
    for o in range(C_OUT):                            # static unroll (3)
        acc = w1_ref[o, 0] * x1[0:1, :] + w2_ref[o, 0] * x2[0:1, :]
        for c in range(1, C_IN):                      # static unroll (3)
            acc = (acc
                   + w1_ref[o, c] * x1[c:c + 1, :]
                   + w2_ref[o, c] * x2[c:c + 1, :])
        y_ref[o:o + 1, :] = acc.astype(y_ref.dtype)   # lane-dense store


def n_to_one_forward(x1, x2, w1, w2, *, block_hw=16384):
    """x1, x2: (N, 3, H, W) f32.  w1, w2: (3, 3) 1x1-conv weights (C_out, C_in).

    Returns conv1(x1) + conv2(x2) with shape (N, 3, H, W)."""
    N, C_in, H, W = x1.shape
    assert x2.shape == x1.shape and C_in == C_IN
    assert w1.shape == (C_OUT, C_IN) and w2.shape == (C_OUT, C_IN)
    HW = H * W

    # Channels stay on the sublane axis, contiguous H*W on the lane axis.
    # Reshape of a contiguous NCHW tensor is free (no transpose, no copy).
    x1f = x1.reshape(N, C_IN, HW)
    x2f = x2.reshape(N, C_IN, HW)

    # Lane tile: full HW if it fits, otherwise a large multiple of 128.
    # Partial last block is handled by Pallas (no jnp.pad copy needed).
    thw = HW if HW <= block_hw else block_hw

    grid = (N, pl.cdiv(HW, thw))

    # Per-step VMEM at thw=16384: 2 inputs * 2 bufs * 192 KiB + 1 output
    # * 2 bufs * 192 KiB ~= 1.1 MiB -- comfortably under the default scoped
    # limit on v5e/v6e/v7x, so no vmem_limit_bytes override is needed.
    y = pl.pallas_call(
        _n_to_one_kernel,
        out_shape=jax.ShapeDtypeStruct((N, C_OUT, HW), x1.dtype),
        grid=grid,
        in_specs=[
            pl.BlockSpec(memory_space=pltpu.MemorySpace.SMEM),      # w1 scalars
            pl.BlockSpec(memory_space=pltpu.MemorySpace.SMEM),      # w2 scalars
            pl.BlockSpec((None, C_IN, thw), lambda n, j: (n, 0, j)),  # x1 tile
            pl.BlockSpec((None, C_IN, thw), lambda n, j: (n, 0, j)),  # x2 tile
        ],
        out_specs=pl.BlockSpec((None, C_OUT, thw), lambda n, j: (n, 0, j)),
        compiler_params=pltpu.CompilerParams(
            dimension_semantics=("parallel", "parallel")),
    )(w1, w2, x1f, x2f)

    return y.reshape(N, C_OUT, H, W)


if __name__ == "__main__":
    key = jax.random.PRNGKey(0)
    kx1, kx2, k1, k2 = jax.random.split(key, 4)

    N, C, H, W = 2, 3, 16, 16
    x1 = jax.random.normal(kx1, (N, C, H, W), dtype=jnp.float32)
    x2 = jax.random.normal(kx2, (N, C, H, W), dtype=jnp.float32)

    # Deterministic 1x1-conv weights (C_out=3, C_in=3), kernel dim squeezed.
    bound = 1.0 / (C ** 0.5)  # same scale family as PyTorch default init
    w1 = jax.random.uniform(k1, (C_OUT, C_IN), jnp.float32, -bound, bound)
    w2 = jax.random.uniform(k2, (C_OUT, C_IN), jnp.float32, -bound, bound)

    y = n_to_one_forward(x1, x2, w1, w2)
    jax.block_until_ready(y)

    # Reference in plain JAX: 1x1 conv == channel matmul, then sum.
    ref = (jnp.einsum("nchw,oc->nohw", x1, w1)
           + jnp.einsum("nchw,oc->nohw", x2, w2))
    assert y.shape == (N, C_OUT, H, W)
    assert jnp.allclose(y, ref, atol=1e-5), "n_to_one mismatch"

    print("KERNEL_OK")
</pallas_src>

<mosaic_0001>
module attributes {stable_mosaic.version = 11 : i64} {
  func.func @_n_to_one_kernel(%arg0: i32, %arg1: i32, %arg2: memref<3x3xf32, #tpu.memory_space<smem>>, %arg3: memref<3x3xf32, #tpu.memory_space<smem>>, %arg4: memref<1x3x256xf32, #tpu.memory_space<vmem>>, %arg5: memref<1x3x256xf32, #tpu.memory_space<vmem>>, %arg6: memref<1x3x256xf32, #tpu.memory_space<vmem>>) attributes {dimension_semantics = [#tpu.dimension_semantics<parallel>, #tpu.dimension_semantics<parallel>], iteration_bounds = array<i64: 2, 1>, scalar_prefetch = 0 : i64, scratch_operands = 0 : i64, tpu.core_type = #tpu.core_type<tc>, window_params = [{transform_indices = @transform_0, window_bounds = array<i64: 3, 3>}, {transform_indices = @transform_1, window_bounds = array<i64: 3, 3>}, {transform_indices = @transform_2, window_bounds = array<i64: 1, 3, 256>}, {transform_indices = @transform_3, window_bounds = array<i64: 1, 3, 256>}, {transform_indices = @transform_4, window_bounds = array<i64: 1, 3, 256>}]} {
    %c0 = arith.constant 0 : index
    %c0_0 = arith.constant 0 : index
    %c0_1 = arith.constant 0 : index
    %0 = vector.load %arg4[%c0, %c0_0, %c0_1] : memref<1x3x256xf32, #tpu.memory_space<vmem>>, vector<1x3x256xf32>
    %1 = vector.shape_cast %0 : vector<1x3x256xf32> to vector<3x256xf32>
    %c0_2 = arith.constant 0 : index
    %c0_3 = arith.constant 0 : index
    %c0_4 = arith.constant 0 : index
    %2 = vector.load %arg5[%c0_2, %c0_3, %c0_4] : memref<1x3x256xf32, #tpu.memory_space<vmem>>, vector<1x3x256xf32>
    %3 = vector.shape_cast %2 : vector<1x3x256xf32> to vector<3x256xf32>
    %c0_5 = arith.constant 0 : index
    %c0_6 = arith.constant 0 : index
    %4 = memref.load %arg2[%c0_5, %c0_6] : memref<3x3xf32, #tpu.memory_space<smem>>
    %5 = vector.extract_strided_slice %1 {offsets = [0, 0], sizes = [1, 256], strides = [1, 1]} : vector<3x256xf32> to vector<1x256xf32>
    %6 = vector.broadcast %4 : f32 to vector<1x256xf32>
    %7 = arith.mulf %6, %5 : vector<1x256xf32>
    %c0_7 = arith.constant 0 : index
    %c0_8 = arith.constant 0 : index
    %8 = memref.load %arg3[%c0_7, %c0_8] : memref<3x3xf32, #tpu.memory_space<smem>>
    %9 = vector.extract_strided_slice %3 {offsets = [0, 0], sizes = [1, 256], strides = [1, 1]} : vector<3x256xf32> to vector<1x256xf32>
    %10 = vector.broadcast %8 : f32 to vector<1x256xf32>
    %11 = arith.mulf %10, %9 : vector<1x256xf32>
    %12 = arith.addf %7, %11 : vector<1x256xf32>
    %c0_9 = arith.constant 0 : index
    %c1 = arith.constant 1 : index
    %13 = memref.load %arg2[%c0_9, %c1] : memref<3x3xf32, #tpu.memory_space<smem>>
    %14 = vector.extract_strided_slice %1 {offsets = [1, 0], sizes = [1, 256], strides = [1, 1]} : vector<3x256xf32> to vector<1x256xf32>
    %15 = vector.broadcast %13 : f32 to vector<1x256xf32>
    %16 = arith.mulf %15, %14 : vector<1x256xf32>
    %17 = arith.addf %12, %16 : vector<1x256xf32>
    %c0_10 = arith.constant 0 : index
    %c1_11 = arith.constant 1 : index
    %18 = memref.load %arg3[%c0_10, %c1_11] : memref<3x3xf32, #tpu.memory_space<smem>>
    %19 = vector.extract_strided_slice %3 {offsets = [1, 0], sizes = [1, 256], strides = [1, 1]} : vector<3x256xf32> to vector<1x256xf32>
    %20 = vector.broadcast %18 : f32 to vector<1x256xf32>
    %21 = arith.mulf %20, %19 : vector<1x256xf32>
    %22 = arith.addf %17, %21 : vector<1x256xf32>
    %c0_12 = arith.constant 0 : index
    %c2 = arith.constant 2 : index
    %23 = memref.load %arg2[%c0_12, %c2] : memref<3x3xf32, #tpu.memory_space<smem>>
    %24 = vector.extract_strided_slice %1 {offsets = [2, 0], sizes = [1, 256], strides = [1, 1]} : vector<3x256xf32> to vector<1x256xf32>
    %25 = vector.broadcast %23 : f32 to vector<1x256xf32>
    %26 = arith.mulf %25, %24 : vector<1x256xf32>
    %27 = arith.addf %22, %26 : vector<1x256xf32>
    %c0_13 = arith.constant 0 : index
    %c2_14 = arith.constant 2 : index
    %28 = memref.load %arg3[%c0_13, %c2_14] : memref<3x3xf32, #tpu.memory_space<smem>>
    %29 = vector.extract_strided_slice %3 {offsets = [2, 0], sizes = [1, 256], strides = [1, 1]} : vector<3x256xf32> to vector<1x256xf32>
    %30 = vector.broadcast %28 : f32 to vector<1x256xf32>
    %31 = arith.mulf %30, %29 : vector<1x256xf32>
    %32 = arith.addf %27, %31 : vector<1x256xf32>
    %c0_15 = arith.constant 0 : index
    %c0_16 = arith.constant 0 : index
    %c0_17 = arith.constant 0 : index
    %33 = vector.load %arg6[%c0_15, %c0_16, %c0_17] : memref<1x3x256xf32, #tpu.memory_space<vmem>>, vector<1x1x256xf32>
    %34 = vector.shape_cast %33 : vector<1x1x256xf32> to vector<1x256xf32>
    %35 = vector.shape_cast %32 : vector<1x256xf32> to vector<1x1x256xf32>
    tpu.vector_store %arg6[%c0_15, %c0_16, %c0_17], %35 {strides = array<i32>} : memref<1x3x256xf32, #tpu.memory_space<vmem>>, vector<1x1x256xf32>,
    %c1_18 = arith.constant 1 : index
    %c0_19 = arith.constant 0 : index
    %36 = memref.load %arg2[%c1_18, %c0_19] : memref<3x3xf32, #tpu.memory_space<smem>>
    %37 = vector.extract_strided_slice %1 {offsets = [0, 0], sizes = [1, 256], strides = [1, 1]} : vector<3x256xf32> to vector<1x256xf32>
    %38 = vector.broadcast %36 : f32 to vector<1x256xf32>
    %39 = arith.mulf %38, %37 : vector<1x256xf32>
    %c1_20 = arith.constant 1 : index
    %c0_21 = arith.constant 0 : index
    %40 = memref.load %arg3[%c1_20, %c0_21] : memref<3x3xf32, #tpu.memory_space<smem>>
    %41 = vector.extract_strided_slice %3 {offsets = [0, 0], sizes = [1, 256], strides = [1, 1]} : vector<3x256xf32> to vector<1x256xf32>
    %42 = vector.broadcast %40 : f32 to vector<1x256xf32>
    %43 = arith.mulf %42, %41 : vector<1x256xf32>
    %44 = arith.addf %39, %43 : vector<1x256xf32>
    %c1_22 = arith.constant 1 : index
    %c1_23 = arith.constant 1 : index
    %45 = memref.load %arg2[%c1_22, %c1_23] : memref<3x3xf32, #tpu.memory_space<smem>>
    %46 = vector.extract_strided_slice %1 {offsets = [1, 0], sizes = [1, 256], strides = [1, 1]} : vector<3x256xf32> to vector<1x256xf32>
    %47 = vector.broadcast %45 : f32 to vector<1x256xf32>
    %48 = arith.mulf %47, %46 : vector<1x256xf32>
    %49 = arith.addf %44, %48 : vector<1x256xf32>
    %c1_24 = arith.constant 1 : index
    %c1_25 = arith.constant 1 : index
    %50 = memref.load %arg3[%c1_24, %c1_25] : memref<3x3xf32, #tpu.memory_space<smem>>
    %51 = vector.extract_strided_slice %3 {offsets = [1, 0], sizes = [1, 256], strides = [1, 1]} : vector<3x256xf32> to vector<1x256xf32>
    %52 = vector.broadcast %50 : f32 to vector<1x256xf32>
    %53 = arith.mulf %52, %51 : vector<1x256xf32>
    %54 = arith.addf %49, %53 : vector<1x256xf32>
    %c1_26 = arith.constant 1 : index
    %c2_27 = arith.constant 2 : index
    %55 = memref.load %arg2[%c1_26, %c2_27] : memref<3x3xf32, #tpu.memory_space<smem>>
    %56 = vector.extract_strided_slice %1 {offsets = [2, 0], sizes = [1, 256], strides = [1, 1]} : vector<3x256xf32> to vector<1x256xf32>
    %57 = vector.broadcast %55 : f32 to vector<1x256xf32>
    %58 = arith.mulf %57, %56 : vector<1x256xf32>
    %59 = arith.addf %54, %58 : vector<1x256xf32>
    %c1_28 = arith.constant 1 : index
    %c2_29 = arith.constant 2 : index
    %60 = memref.load %arg3[%c1_28, %c2_29] : memref<3x3xf32, #tpu.memory_space<smem>>
    %61 = vector.extract_strided_slice %3 {offsets = [2, 0], sizes = [1, 256], strides = [1, 1]} : vector<3x256xf32> to vector<1x256xf32>
    %62 = vector.broadcast %60 : f32 to vector<1x256xf32>
    %63 = arith.mulf %62, %61 : vector<1x256xf32>
    %64 = arith.addf %59, %63 : vector<1x256xf32>
    %c0_30 = arith.constant 0 : index
    %c1_31 = arith.constant 1 : index
    %c0_32 = arith.constant 0 : index
    %65 = vector.load %arg6[%c0_30, %c1_31, %c0_32] : memref<1x3x256xf32, #tpu.memory_space<vmem>>, vector<1x1x256xf32>
    %66 = vector.shape_cast %65 : vector<1x1x256xf32> to vector<1x256xf32>
    %67 = vector.shape_cast %64 : vector<1x256xf32> to vector<1x1x256xf32>
    tpu.vector_store %arg6[%c0_30, %c1_31, %c0_32], %67 {strides = array<i32>} : memref<1x3x256xf32, #tpu.memory_space<vmem>>, vector<1x1x256xf32>,
    %c2_33 = arith.constant 2 : index
    %c0_34 = arith.constant 0 : index
    %68 = memref.load %arg2[%c2_33, %c0_34] : memref<3x3xf32, #tpu.memory_space<smem>>
    %69 = vector.extract_strided_slice %1 {offsets = [0, 0], sizes = [1, 256], strides = [1, 1]} : vector<3x256xf32> to vector<1x256xf32>
    %70 = vector.broadcast %68 : f32 to vector<1x256xf32>
    %71 = arith.mulf %70, %69 : vector<1x256xf32>
    %c2_35 = arith.constant 2 : index
    %c0_36 = arith.constant 0 : index
    %72 = memref.load %arg3[%c2_35, %c0_36] : memref<3x3xf32, #tpu.memory_space<smem>>
    %73 = vector.extract_strided_slice %3 {offsets = [0, 0], sizes = [1, 256], strides = [1, 1]} : vector<3x256xf32> to vector<1x256xf32>
    %74 = vector.broadcast %72 : f32 to vector<1x256xf32>
    %75 = arith.mulf %74, %73 : vector<1x256xf32>
    %76 = arith.addf %71, %75 : vector<1x256xf32>
    %c2_37 = arith.constant 2 : index
    %c1_38 = arith.constant 1 : index
    %77 = memref.load %arg2[%c2_37, %c1_38] : memref<3x3xf32, #tpu.memory_space<smem>>
    %78 = vector.extract_strided_slice %1 {offsets = [1, 0], sizes = [1, 256], strides = [1, 1]} : vector<3x256xf32> to vector<1x256xf32>
    %79 = vector.broadcast %77 : f32 to vector<1x256xf32>
    %80 = arith.mulf %79, %78 : vector<1x256xf32>
    %81 = arith.addf %76, %80 : vector<1x256xf32>
    %c2_39 = arith.constant 2 : index
    %c1_40 = arith.constant 1 : index
    %82 = memref.load %arg3[%c2_39, %c1_40] : memref<3x3xf32, #tpu.memory_space<smem>>
    %83 = vector.extract_strided_slice %3 {offsets = [1, 0], sizes = [1, 256], strides = [1, 1]} : vector<3x256xf32> to vector<1x256xf32>
    %84 = vector.broadcast %82 : f32 to vector<1x256xf32>
    %85 = arith.mulf %84, %83 : vector<1x256xf32>
    %86 = arith.addf %81, %85 : vector<1x256xf32>
    %c2_41 = arith.constant 2 : index
    %c2_42 = arith.constant 2 : index
    %87 = memref.load %arg2[%c2_41, %c2_42] : memref<3x3xf32, #tpu.memory_space<smem>>
    %88 = vector.extract_strided_slice %1 {offsets = [2, 0], sizes = [1, 256], strides = [1, 1]} : vector<3x256xf32> to vector<1x256xf32>
    %89 = vector.broadcast %87 : f32 to vector<1x256xf32>
    %90 = arith.mulf %89, %88 : vector<1x256xf32>
    %91 = arith.addf %86, %90 : vector<1x256xf32>
    %c2_43 = arith.constant 2 : index
    %c2_44 = arith.constant 2 : index
    %92 = memref.load %arg3[%c2_43, %c2_44] : memref<3x3xf32, #tpu.memory_space<smem>>
    %93 = vector.extract_strided_slice %3 {offsets = [2, 0], sizes = [1, 256], strides = [1, 1]} : vector<3x256xf32> to vector<1x256xf32>
    %94 = vector.broadcast %92 : f32 to vector<1x256xf32>
    %95 = arith.mulf %94, %93 : vector<1x256xf32>
    %96 = arith.addf %91, %95 : vector<1x256xf32>
    %c0_45 = arith.constant 0 : index
    %c2_46 = arith.constant 2 : index
    %c0_47 = arith.constant 0 : index
    %97 = vector.load %arg6[%c0_45, %c2_46, %c0_47] : memref<1x3x256xf32, #tpu.memory_space<vmem>>, vector<1x1x256xf32>
    %98 = vector.shape_cast %97 : vector<1x1x256xf32> to vector<1x256xf32>
    %99 = vector.shape_cast %96 : vector<1x256xf32> to vector<1x1x256xf32>
    tpu.vector_store %arg6[%c0_45, %c2_46, %c0_47], %99 {strides = array<i32>} : memref<1x3x256xf32, #tpu.memory_space<vmem>>, vector<1x1x256xf32>,
    return
  }
  func.func @transform_0(%arg0: i32, %arg1: i32) -> (i32, i32) {
    %c0_i32 = arith.constant 0 : i32
    %c0_i32_0 = arith.constant 0 : i32
    %c0_i32_1 = arith.constant 0 : i32
    return %c0_i32, %c0_i32_0 : i32, i32
  }
  func.func @transform_1(%arg0: i32, %arg1: i32) -> (i32, i32) {
    %c0_i32 = arith.constant 0 : i32
    %c0_i32_0 = arith.constant 0 : i32
    %c0_i32_1 = arith.constant 0 : i32
    return %c0_i32, %c0_i32_0 : i32, i32
  }
  func.func @transform_2(%arg0: i32, %arg1: i32) -> (i32, i32, i32) {
    %c0_i32 = arith.constant 0 : i32
    %c0_i32_0 = arith.constant 0 : i32
    return %arg0, %c0_i32, %arg1 : i32, i32, i32
  }
  func.func @transform_3(%arg0: i32, %arg1: i32) -> (i32, i32, i32) {
    %c0_i32 = arith.constant 0 : i32
    %c0_i32_0 = arith.constant 0 : i32
    return %arg0, %c0_i32, %arg1 : i32, i32, i32
  }
  func.func @transform_4(%arg0: i32, %arg1: i32) -> (i32, i32, i32) {
    %c0_i32 = arith.constant 0 : i32
    %c0_i32_0 = arith.constant 0 : i32
    return %arg0, %c0_i32, %arg1 : i32, i32, i32
  }
}

</mosaic_0001>

<bundles_post_ra>
// kernel: tpu_custom_call.1
= control target key start
LH: loop header
LB: loop body
LE: loop exit
PB: predicated region body
PF: predicated region fallthrough
CT: control target
= control target key end

     0   :  { %9 = vsyncpa [#allocation3], 0  ;;  %s944_s0 = inlined_call_operand.vmem [shape: f32[3,3], index: 0, kind: input, shape index: {}]   ;;  %s945_s1 = inlined_call_operand.vmem [shape: f32[3,3], index: 1, kind: input, shape index: {}]   ;;  %s946_s2 = inlined_call_operand.vmem [shape: f32[2,3,256], index: 2, kind: input, shape index: {}]   ;;  %s947_s3 = inlined_call_operand.vmem [shape: f32[2,3,256], index: 3, kind: input, shape index: {}]   ;;  %s948_s4 = inlined_call_operand.vmem [shape: f32[2,3,256], index: 4, kind: output, shape index: {}]  }
   0x1   :  { %10 = vsyncpa [#allocation5], 0  ;;  %s789_s15 = smov 0   ;;  %s791_s16 = smov 0  }
   0x2   :  { %s793_s17 = smov 0  }
   0x3 LB: > { %s603_s18 = sadd.s32 4294967295, %s759_s17   ;;  %s28_s19 = sadd.s32 1, %s755_s16  ;;  %s759_s17 = sphi %s793_s17, %s16_s17   ;;  %s755_s16 = sphi %s791_s16, %s960_s16   ;;  %s751_s15 = sphi %s789_s15, %s959_s15  }
   0x4   : > { %p30_p0 = scmp.ge.s32.totalorder %s28_s19, 2  ;;  %p605_p1 = scmp.ge.s32.totalorder %s759_s17, 1 }
   0x5   : > { %p159_p2 = scmp.lt.s32.totalorder %s759_s17, 3  ;;  %p814_p4 = scmp.eq.s32.totalorder %s603_s18, 0 }
   0x6   : > { %s962_s19 = smov (%p30_p0, %s28_s19), 0  ;;  %s172_s24 = sshll.u32 %s944_s0, 4  ;;  %s173_s24 = int_to_ptr.vmem [resolvable:$true] %s172_s24 }
   0x7   : > { %p810_p3 = pnand %p605_p1, %p159_p2  ;;  %s183_s27 = sshll.u32 %s945_s1, 4  ;;  %s184_s27 = int_to_ptr.vmem [resolvable:$true] %s183_s27 }
   0x8   : > { %s953_s21 = scalar_select %p814_p4, 1, 0 }
   0x9   : > { %s952_s20 = scalar_select %p810_p3, 1, 0 }
   0xa   : > { %p661_p5 = pneg %p810_p3  ;;  %s699_s29 = scalar_lea.vmem %s173_s24, 64 }
   0xb   : > { %p700_p7 = scmp.ne.s32.totalorder %s173_s24, %s699_s29  ;;  %p707_p11 = scmp.lt.s32.totalorder %s173_s24, %s173_s24 }
   0xc   : > { %p828_p6 = pnand %p814_p4, %p661_p5  ;;  %p708_p12 = scmp.lt.s32.totalorder %s699_s29, %s699_s29 }
   0xe   : > { %p701_p8 = pneg %p828_p6  ;;  %p709_p13 = por %p708_p12, %p707_p11 }
  0x10   : > { %p702_p9 = pnand %p701_p8, %p700_p7 }
  0x12   : > { %p703_p10 = pneg %p702_p9 }
  0x14   : > { %p710_p0 = pnand %p709_p13, %p703_p10 }
  0x16   : > { %713 = shalt.err (!%p710_p0)
}
  0x17   : > { %s761_s30 = smov [#allocation2]   ;;  %s714_s5 = scalar_lea.vmem %s184_s27, 64 }
  0x18   : > { %664 = dma.vmem_to_smem (!%p828_p6), %s173_s24, 64, %s761_s30, [#allocation3]  }
  0x19   : > { %p715_p1 = scmp.ne.s32.totalorder %s184_s27, %s714_s5  ;;  %p722_p4 = scmp.lt.s32.totalorder %s184_s27, %s184_s27 }
  0x1a   : > { %p723_p3 = scmp.lt.s32.totalorder %s714_s5, %s714_s5 }
  0x1b   : > { %p717_p2 = pnand %p715_p1, %p701_p8 }
  0x1c   : > { %p724_p7 = por %p723_p3, %p722_p4 }
  0x1d   : > { %p718_p5 = pneg %p717_p2 }
  0x1f   : > { %p725_p9 = pnand %p724_p7, %p718_p5 }
  0x21   : > { %728 = shalt.err (!%p725_p9)
}
  0x22   : > { %s762_s6 = smov [#allocation4]   ;;  %p955_p10 = scmp.ne.s32.totalorder %s952_s20, 0 }
  0x23   : > { %667 = dma.vmem_to_smem (!%p828_p6), %s184_s27, 64, %s762_s6, [#allocation5]  }
  0x24   : > { %222 = sbr.rel (%p955_p10) target bundleno = 84 (0x54), region = 36  ;;  %p956_p11 = scmp.ne.s32.totalorder (!%p955_p10), %s953_s21, 0 }
  0x2b   : > { %742 = dma.done.wait (%p956_p11), [#allocation3], 64  }
  0x2c   : > { %744 = vsyncadd (%p956_p11), [#allocation3], 4294967232 }
  0x2d   : > { %746 = dma.done.wait (%p956_p11), [#allocation5], 64  }
  0x2e   : > { %748 = vsyncadd (%p956_p11), [#allocation5], 4294967232 }
  0x2f   : > { %232 = sfence }
  0x30   : > { %p271_p3 = scmp.lt.s32.totalorder %s751_s15, 1  ;;  %s302_s7 = sld [smem:[#allocation2]]  ;;  %v763_v0 = vmov 1966171168   ;;  %v345_v2 = vlaneseq }
  0x31   : > { %s305_s8 = sld [smem:[#allocation4]]  ;;  %s618_s9 = sld [smem:[#allocation2 + $0x1]]  ;;  %v343_v1 = vunpack.c.l.s4 %v763_v0 }
  0x32   : > { %s964_s15 = smov (!%p271_p3, %s751_s15), 1  ;;  %s620_s10 = sld [smem:[#allocation4 + $0x1]]  ;;  %v346_v14 = vshrl.u32 %v345_v2, 7  ;;  %vm895_vm0 = vcmp.lt.s32.totalorder %v345_v2, 256 }
  0x33   : > { %s622_s11 = sld [smem:[#allocation2 + $0x2]]  ;;  %s850_s12 = sshll.u32 %s964_s15, 3  ;;  %v344_v13 = vunpack.c.0.s8 %v343_v1 }
  0x34   : > { %s852_s13 = sld [smem:[#allocation4 + $0x2]]  ;;  %s278_s20 = scalar_lea.vmem %s946_s2, %s850_s12 }
  0x35   : > { %s288_s23 = scalar_lea.vmem %s947_s3, %s850_s12  ;;  %v862_v3 = vld [vmem:[%s278_s20] sm:$0x77]  ;;  %s866_s15 = sld [smem:[#allocation2 + $0x80]]  ;;  %v347_v24 = vsub.s32 %v344_v13, %v346_v14 }
  0x36   : > { %v864_v4 = vld [vmem:[%s288_s23] sm:$0x77]  ;;  %v303_v5 = vstv %s302_s7  ;;  %s869_s24 = sld [smem:[#allocation4 + $0x80]]  ;;  %s871_s25 = sld [smem:[#allocation2 + $0x81]] }
  0x37   : > { %v304_v6 = vmul.f32 %v303_v5, %v862_v3  ;;  %v306_v7 = vstv %s305_s8  ;;  %v310_v8 = vstv %s618_s9  ;;  %s875_s26 = sld [smem:[#allocation4 + $0x81]]  ;;  %s877_s27 = sld [smem:[#allocation2 + $0x82]] }
  0x38   : > { %v307_v9 = vmul.f32 %v306_v7, %v864_v4  ;;  %v311_v10 = vmul.f32 %v310_v8, %v862_v3  ;;  %v318_v11 = vstv %s620_s10  ;;  %s879_s28 = sld [smem:[#allocation4 + $0x82]]  ;;  %s881_s29 = sld [smem:[#allocation2 + $0x100]] }
  0x39   : > { %v326_v12 = vstv %s622_s11  ;;  %v319_v17 = vmul.f32 %v318_v11, %v864_v4  ;;  %s885_s30 = sld [smem:[#allocation4 + $0x100]]  ;;  %s888_s5 = sld [smem:[#allocation2 + $0x101]] }
  0x3a   : > { %v308_v15 = vadd.f32 %v307_v9, %v304_v6  ;;  %v619_v16 = vrot.slane %v311_v10, 9  ;;  %v327_v18 = vmul.f32 %v326_v12, %v862_v3  ;;  %v334_v19 = vstv %s852_s13  ;;  %s891_s6 = sld [smem:[#allocation4 + $0x101]]  ;;  %s893_s7 = sld [smem:[#allocation2 + $0x102]] }
  0x3b   : > { %v621_v21 = vrot.slane %v319_v17, 9  ;;  %v335_v23 = vmul.f32 %v334_v19, %v864_v4  ;;  %v363_v26 = vstv %s866_s15  ;;  %s904_s8 = sld [smem:[#allocation4 + $0x102]]  ;;  %s298_s11 = scalar_lea.vmem %s948_s4, %s850_s12 }
  0x3c   : > { %v316_v20 = vadd.f32 %v619_v16, %v308_v15  ;;  %v623_v22 = vrot.slane %v327_v18, 10  ;;  %v366_v27 = vstv %s869_s24  ;;  %v370_v28 = vstv %s871_s25 }
  0x3d   : > { %v625_v30 = vrot.slane %v335_v23, 10  ;;  %v364_v31 = vmul.f32 %v363_v26, %v862_v3  ;;  %v367_v32 = vmul.f32 %v366_v27, %v864_v4  ;;  %v371_v33 = vmul.f32 %v370_v28, %v862_v3 }
  0x3e   : > { %v324_v29 = vadd.f32 %v621_v21, %v316_v20  ;;  %v378_v34 = vstv %s875_s26  ;;  %v386_v35 = vstv %s877_s27  ;;  %v394_v36 = vstv %s879_s28 }
  0x3f   : > { %v368_v38 = vadd.f32 %v367_v32, %v364_v31  ;;  %v379_v39 = vmul.f32 %v378_v34, %v864_v4  ;;  %v387_v40 = vmul.f32 %v386_v35, %v862_v3  ;;  %v629_v41 = vrot.slane %v371_v33, 9 }
  0x40   : > { %v332_v37 = vadd.f32 %v623_v22, %v324_v29  ;;  %v395_v42 = vmul.f32 %v394_v36, %v864_v4  ;;  %v420_v43 = vstv %s881_s29  ;;  %v423_v44 = vstv %s885_s30 }
  0x41   : > { %v631_v46 = vrot.slane %v379_v39, 9  ;;  %v633_v47 = vrot.slane %v387_v40, 10  ;;  %v421_v48 = vmul.f32 %v420_v43, %v862_v3  ;;  %v376_v49 = vadd.f32 %v629_v41, %v368_v38 }
  0x42   : > { %v340_v45 = vadd.f32 %v625_v30, %v332_v37  ;;  %v635_v50 = vrot.slane %v395_v42, 10  ;;  %v424_v51 = vmul.f32 %v423_v44, %v864_v4  ;;  %v427_v52 = vstv %s888_s5 }
  0x43   : > { %v428_v54 = vmul.f32 %v427_v52, %v862_v3  ;;  %v435_v55 = vstv %s891_s6  ;;  %v443_v56 = vstv %s893_s7  ;;  %v384_v57 = vadd.f32 %v631_v46, %v376_v49 }
  0x44   : > { %v348_v53 = vrot.slane %v340_v45, %v347_v24  ;;  %v425_v58 = vadd.f32 %v424_v51, %v421_v48  ;;  %v436_v59 = vmul.f32 %v435_v55, %v864_v4  ;;  %v444_v60 = vmul.f32 %v443_v56, %v862_v3 }
  0x45   : > { %v640_v62 = vrot.slane %v428_v54, 9  ;;  %v451_v63 = vstv %s904_s8  ;;  %v392_v0 = vadd.f32 %v633_v47, %v384_v57 }
  0x46   : > { %v355_v61 = vrot.slane %v348_v53, %v347_v24  ;;  %v642_v1 = vrot.slane %v436_v59, 9  ;;  %v452_v2 = vmul.f32 %v451_v63, %v864_v4  ;;  %v644_v6 = vrot.slane %v444_v60, 10 }
  0x47   : > { %v433_v5 = vadd.f32 %v640_v62, %v425_v58  ;;  %v400_v7 = vadd.f32 %v635_v50, %v392_v0 }
  0x48   : > { %361 = vst.msk [vmem:[%s298_s11] ss:$4 sm:$0x3] %vm895_vm0, %v355_v61  ;;  %v646_v9 = vrot.slane %v452_v2, 10 }
  0x49   : > { %v441_v8 = vadd.f32 %v642_v1, %v433_v5  ;;  %v408_v10 = vrot.slane %v400_v7, %v347_v24 }
  0x4b   : > { %v449_v11 = vadd.f32 %v644_v6, %v441_v8  ;;  %v415_v12 = vrot.slane %v408_v10, %v347_v24 }
  0x4d   : > { %v457_v13 = vadd.f32 %v646_v9, %v449_v11  ;;  %636 = vst.msk [vmem:[%s298_s11 + $0x1] ss:$4 sm:$0x3] %vm895_vm0, %v415_v12 }
  0x4f   : > { %v465_v3 = vrot.slane %v457_v13, %v347_v24 }
  0x51   : > { %v472_v14 = vrot.slane %v465_v3, %v347_v24 }
  0x53   : > { %647 = vst.msk [vmem:[%s298_s11 + $0x2] ss:$4 sm:$0x3] %vm895_vm0, %v472_v14 }
  0x54 PF: > { %s16_s17 = sadd.s32 1, %s759_s17   ;;  %s959_s15 = smov %s755_s16 }
  0x55   : > { %p13_p4 = scmp.ge.s32.totalorder %s16_s17, 4   ;;  %s960_s16 = smov %s962_s19 }
  0x57   :  { %15 = sbr.rel (!%p13_p4) target bundleno = 3 (0x3), region = 80 }
  0x5e   :  { %506 = vsyncpa [#allocation3], 1 }
  0x5f   :  { %508 = vsyncpa [#allocation3 + $0x1], 1 }
  0x60   :  { %509 = vsyncpa [#allocation5], 1 }

</bundles_post_ra>
